<compile_context>
chip_gen: v7x
topology: tpu7x:2x2x1
jax: 0.10.0
libtpu: 0.0.40
codegen_flags: <defaults>
</compile_context>

<pallas_src>
import functools
import math

import jax
import jax.numpy as jnp
from jax.experimental import pallas as pl
from jax.experimental.pallas import tpu as pltpu


def _round_up(x, m):
    return (x + m - 1) // m * m


def _layernorm_f32(x, gamma, beta, eps=1e-6):
    # torch.nn.LayerNorm(eps=1e-6): biased variance over the last dim.
    mu = jnp.mean(x, axis=-1, keepdims=True)
    var = jnp.mean(jnp.square(x - mu), axis=-1, keepdims=True)
    return (x - mu) * jax.lax.rsqrt(var + eps) * gamma + beta


# ----------------------------------------------------------------------------
# Kernel 1: LN1 + multi-head self-attention + output projection + residual
# ----------------------------------------------------------------------------
def attention_block_kernel(x_ref, g1_ref, beta1_ref, wqkv_ref, bqkv_ref,
                           wo_ref, bo_ref, o_ref, p_ref, *, n_heads, head_dim):
    cdt = wqkv_ref.dtype                                    # compute dtype (bf16/f32)
    H = n_heads * head_dim
    scale = 1.0 / math.sqrt(head_dim)

    xb = x_ref[0].astype(jnp.float32)                       # (S, H) f32
    ln = _layernorm_f32(xb, g1_ref[...], beta1_ref[...])    # LN1, eps=1e-6
    ln_c = ln.astype(cdt)

    # Fused, lane-dense QKV projection: one (S,H)@(H,3H) MXU matmul,
    # columns ordered [Q | K | V].
    qkv = jnp.dot(ln_c, wqkv_ref[...], preferred_element_type=jnp.float32)
    qkv = qkv + bqkv_ref[...]                               # (S, 3H) f32

    ctx_parts = []
    for h in range(n_heads):                                # static per-head loop
        lo = h * head_dim
        q_h = (qkv[:, lo:lo + head_dim] * scale).astype(cdt)          # fold 1/sqrt(d)
        k_h = qkv[:, H + lo:H + lo + head_dim].astype(cdt)
        v_h = qkv[:, 2 * H + lo:2 * H + lo + head_dim].astype(cdt)

        s = jax.lax.dot_general(q_h, k_h, (((1,), (1,)), ((), ())),
                                preferred_element_type=jnp.float32)   # (S, S)
        s = s - jnp.max(s, axis=-1, keepdims=True)
        e = jnp.exp(s)
        # One reciprocal per row + broadcast multiply (cheaper than S*S divides).
        p = e * (1.0 / jnp.sum(e, axis=-1, keepdims=True))            # softmax f32
        p_ref[0, h] = p.astype(p_ref.dtype)                 # attention_probs (vis=True)

        # TODO(synk): attn_dropout / proj_dropout are identity (eval semantics).
        ctx_parts.append(jnp.dot(p.astype(cdt), v_h,
                                 preferred_element_type=jnp.float32))  # (S, d) f32

    # Merge heads along lanes, then ONE wide output projection (S,H)@(H,H).
    ctx = jnp.concatenate(ctx_parts, axis=-1).astype(cdt)    # (S, H)
    out = jnp.dot(ctx, wo_ref[...], preferred_element_type=jnp.float32)
    out = out + bo_ref[...] + xb                             # + bias + residual
    o_ref[0] = out.astype(o_ref.dtype)


def _attention_call(x, g1, beta1, wqkv, bqkv, wo, bo, *, n_heads, head_dim,
                    vmem_limit):
    B, S, H = x.shape
    kernel = functools.partial(attention_block_kernel,
                               n_heads=n_heads, head_dim=head_dim)
    cost = pl.CostEstimate(
        flops=B * (2 * S * H * 3 * H            # QKV projection
                   + 4 * n_heads * S * S * head_dim   # scores + context
                   + 2 * S * H * H),            # output projection
        transcendentals=B * n_heads * S * S,    # exp in softmax
        bytes_accessed=(2 * B * S * H * x.dtype.itemsize
                        + B * n_heads * S * S * 4
                        + 4 * H * H * wqkv.dtype.itemsize
                        + 5 * H * 4),
    )
    return pl.pallas_call(
        kernel,
        out_shape=(jax.ShapeDtypeStruct((B, S, H), x.dtype),
                   jax.ShapeDtypeStruct((B, n_heads, S, S), jnp.float32)),
        grid_spec=pltpu.PrefetchScalarGridSpec(
            num_scalar_prefetch=0,
            grid=(B,),
            in_specs=[
                pl.BlockSpec((1, S, H), lambda b: (b, 0, 0)),      # x
                pl.BlockSpec((1, H), lambda b: (0, 0)),            # LN1 gamma
                pl.BlockSpec((1, H), lambda b: (0, 0)),            # LN1 beta
                pl.BlockSpec((H, 3 * H), lambda b: (0, 0)),        # [Wq|Wk|Wv]
                pl.BlockSpec((1, 3 * H), lambda b: (0, 0)),        # [bq|bk|bv]
                pl.BlockSpec((H, H), lambda b: (0, 0)),            # Wo
                pl.BlockSpec((1, H), lambda b: (0, 0)),            # bo
            ],
            out_specs=[
                pl.BlockSpec((1, S, H), lambda b: (b, 0, 0)),              # attn out + residual
                pl.BlockSpec((1, n_heads, S, S), lambda b: (b, 0, 0, 0)),  # attention probs
            ],
        ),
        compiler_params=pltpu.CompilerParams(
            dimension_semantics=("parallel",),
            vmem_limit_bytes=vmem_limit,
        ),
        cost_estimate=cost,
    )(x, g1, beta1, wqkv, bqkv, wo, bo)


# ----------------------------------------------------------------------------
# Kernel 2: LN2 + MLP (fc1 -> exact GELU -> fc2) + residual, chunked over Hm
# ----------------------------------------------------------------------------
def ln_mlp_kernel(x_ref, g_ref, beta_ref, w1_ref, b1_ref, w2_ref, b2_ref,
                  o_ref, ln_ref, acc_ref):
    j = pl.program_id(1)

    @pl.when(j == 0)
    def _init():
        xb = x_ref[...].astype(jnp.float32)
        ln = _layernorm_f32(xb, g_ref[...], beta_ref[...])     # LN2, eps=1e-6
        ln_ref[...] = ln.astype(ln_ref.dtype)                  # cached for all chunks
        acc_ref[...] = jnp.zeros_like(acc_ref)

    h = jnp.dot(ln_ref[...], w1_ref[...], preferred_element_type=jnp.float32)
    h = h + b1_ref[...]
    h = jax.nn.gelu(h, approximate=False)                      # exact erf GELU (torch default)
    # TODO(synk): dense dropout is identity (eval semantics).
    acc_ref[...] += jnp.dot(h.astype(w2_ref.dtype), w2_ref[...],
                            preferred_element_type=jnp.float32)

    @pl.when(j == pl.num_programs(1) - 1)
    def _finalize():
        y = acc_ref[...] + b2_ref[...] + x_ref[...].astype(jnp.float32)  # +b2 once, +residual
        o_ref[...] = y.astype(o_ref.dtype)


def _ln_mlp_call(x2d, g2, beta2, w1, b1, w2, b2, *, tile_m, tile_n, vmem_limit):
    M, H = x2d.shape
    Hm = w1.shape[1]
    grid = (pl.cdiv(M, tile_m), pl.cdiv(Hm, tile_n))   # exact after wrapper padding
    cost = pl.CostEstimate(
        flops=4 * M * H * Hm,                          # two matmuls
        transcendentals=M * Hm,                        # erf in GELU
        bytes_accessed=(2 * M * H * x2d.dtype.itemsize
                        + grid[0] * 2 * H * Hm * w1.dtype.itemsize
                        + (Hm + 3 * H) * 4),
    )
    return pl.pallas_call(
        ln_mlp_kernel,
        out_shape=jax.ShapeDtypeStruct((M, H), x2d.dtype),
        grid_spec=pltpu.PrefetchScalarGridSpec(
            num_scalar_prefetch=0,
            grid=grid,
            in_specs=[
                pl.BlockSpec((tile_m, H), lambda i, j: (i, 0)),   # x tile (LN input + residual)
                pl.BlockSpec((1, H), lambda i, j: (0, 0)),        # LN2 gamma
                pl.BlockSpec((1, H), lambda i, j: (0, 0)),        # LN2 beta
                pl.BlockSpec((H, tile_n), lambda i, j: (0, j)),   # W1 column chunk
                pl.BlockSpec((1, tile_n), lambda i, j: (0, j)),   # b1 chunk
                pl.BlockSpec((tile_n, H), lambda i, j: (j, 0)),   # W2 row chunk
                pl.BlockSpec((1, H), lambda i, j: (0, 0)),        # b2
            ],
            out_specs=pl.BlockSpec((tile_m, H), lambda i, j: (i, 0)),
            scratch_shapes=[
                pltpu.VMEM((tile_m, H), w1.dtype),        # cached LN2(x) tile (compute dtype)
                pltpu.VMEM((tile_m, H), jnp.float32),     # f32 output accumulator
            ],
        ),
        compiler_params=pltpu.CompilerParams(
            dimension_semantics=("parallel", "arbitrary"),
            vmem_limit_bytes=vmem_limit,
        ),
        cost_estimate=cost,
    )(x2d, g2, beta2, w1, b1, w2, b2)


# ----------------------------------------------------------------------------
# Wrapper: full Block forward
# ----------------------------------------------------------------------------
def block_forward(x, params, *, n_heads, compute_dtype=jnp.bfloat16,
                  tile_m=512, tile_n=1024, vmem_limit_bytes=48 * 1024 * 1024):
    """x: [B, S, H]; returns (out [B, S, H], attention_probs [B, nH, S, S])."""
    B, S, H = x.shape
    assert H % n_heads == 0
    d = H // n_heads
    cd = compute_dtype
    r2 = lambda v: v.reshape(1, -1).astype(jnp.float32)

    # ---- fused QKV weight [Q|K|V] along the output dim (stored [in, out]) ----
    wqkv = jnp.concatenate([params["wq"], params["wk"], params["wv"]],
                           axis=1).astype(cd)                       # (H, 3H)
    bqkv = jnp.concatenate([params["bq"], params["bk"], params["bv"]]
                           ).reshape(1, 3 * H).astype(jnp.float32)  # (1, 3H)

    attn_out, probs = _attention_call(
        x, r2(params["ln1_g"]), r2(params["ln1_b"]), wqkv, bqkv,
        params["wo"].astype(cd), r2(params["bo"]),
        n_heads=n_heads, head_dim=d, vmem_limit=vmem_limit_bytes)

    # ---- FFN sub-block on flattened tokens ----
    Hm = params["w1"].shape[1]
    M = B * S
    x2d = attn_out.reshape(M, H)

    # Token tiling: big tiles, shrunk adaptively so zero-padding waste stays small.
    tile_m = min(tile_m, _round_up(M, 8))
    n_tiles = pl.cdiv(M, tile_m)
    tile_m = _round_up(pl.cdiv(M, n_tiles), 8)
    M_pad = _round_up(M, tile_m)
    if M_pad != M:
        x2d = jnp.pad(x2d, ((0, M_pad - M), (0, 0)))

    # MLP-dim chunking: single chunk if Hm is small, else lane-dense 128-multiples.
    if Hm <= tile_n:
        tile_n = Hm
    else:
        tile_n = _round_up(tile_n, 128)
    Hm_pad = _round_up(Hm, tile_n)

    w1 = params["w1"].astype(cd)
    w2 = params["w2"].astype(cd)
    b1 = params["b1"].reshape(1, Hm).astype(jnp.float32)
    if Hm_pad != Hm:
        # Exact: gelu(0) == 0 and padded W2 rows are zero.
        w1 = jnp.pad(w1, ((0, 0), (0, Hm_pad - Hm)))
        w2 = jnp.pad(w2, ((0, Hm_pad - Hm), (0, 0)))
        b1 = jnp.pad(b1, ((0, 0), (0, Hm_pad - Hm)))

    y2d = _ln_mlp_call(x2d, r2(params["ln2_g"]), r2(params["ln2_b"]),
                       w1, b1, w2, r2(params["b2"]),
                       tile_m=tile_m, tile_n=tile_n, vmem_limit=vmem_limit_bytes)
    return y2d[:M].reshape(B, S, H), probs


# ----------------------------------------------------------------------------
# Demo / self-check
# ----------------------------------------------------------------------------
if __name__ == "__main__":
    # Toy config (real deployments should use H, Hm that are multiples of 128
    # so all stores are lane-dense).
    hidden_size, mlp_size, n_heads = 32, 64, 4
    batch, seq = 2, 8

    key = jax.random.PRNGKey(0)
    keys = jax.random.split(key, 16)

    def xavier(k, fan_in, fan_out):
        limit = math.sqrt(6.0 / (fan_in + fan_out))
        return jax.random.uniform(k, (fan_in, fan_out), jnp.float32, -limit, limit)

    x = jax.random.normal(keys[0], (batch, seq, hidden_size), jnp.float32)

    params = dict(
        ln1_g=jnp.ones((hidden_size,), jnp.float32),
        ln1_b=jnp.zeros((hidden_size,), jnp.float32),
        wq=xavier(keys[1], hidden_size, hidden_size),
        bq=0.02 * jax.random.normal(keys[2], (hidden_size,), jnp.float32),
        wk=xavier(keys[3], hidden_size, hidden_size),
        bk=0.02 * jax.random.normal(keys[4], (hidden_size,), jnp.float32),
        wv=xavier(keys[5], hidden_size, hidden_size),
        bv=0.02 * jax.random.normal(keys[6], (hidden_size,), jnp.float32),
        wo=xavier(keys[7], hidden_size, hidden_size),
        bo=0.02 * jax.random.normal(keys[8], (hidden_size,), jnp.float32),
        ln2_g=jnp.ones((hidden_size,), jnp.float32),
        ln2_b=jnp.zeros((hidden_size,), jnp.float32),
        w1=xavier(keys[9], hidden_size, mlp_size),
        b1=1e-6 * jax.random.normal(keys[10], (mlp_size,), jnp.float32),
        w2=xavier(keys[11], mlp_size, hidden_size),
        b2=1e-6 * jax.random.normal(keys[12], (hidden_size,), jnp.float32),
    )

    # Pure-JAX f32 reference of the torch Block forward.
    def reference_block(xin, p):
        d = hidden_size // n_heads
        h0 = xin
        xn = _layernorm_f32(xin, p["ln1_g"], p["ln1_b"])
        q = xn @ p["wq"] + p["bq"]
        k = xn @ p["wk"] + p["bk"]
        v = xn @ p["wv"] + p["bv"]

        def split(t):
            return t.reshape(batch, seq, n_heads, d).transpose(0, 2, 1, 3)

        qh, kh, vh = split(q), split(k), split(v)
        s = jnp.einsum("bhqd,bhkd->bhqk", qh, kh) / math.sqrt(d)
        probs = jax.nn.softmax(s, axis=-1)
        ctx = jnp.einsum("bhqk,bhkd->bhqd", probs, vh)
        ctx = ctx.transpose(0, 2, 1, 3).reshape(batch, seq, hidden_size)
        x1 = ctx @ p["wo"] + p["bo"] + h0
        xn2 = _layernorm_f32(x1, p["ln2_g"], p["ln2_b"])
        y = jax.nn.gelu(xn2 @ p["w1"] + p["b1"], approximate=False) @ p["w2"] + p["b2"]
        return x1 + y, probs

    out_ref, probs_ref = reference_block(x, params)

    # 1) f32 compute path — tight check.
    out32, probs32 = block_forward(x, params, n_heads=n_heads,
                                   compute_dtype=jnp.float32)
    jax.block_until_ready(out32)
    assert jnp.allclose(out32, out_ref, atol=1e-4, rtol=1e-4), "f32 output mismatch"
    assert jnp.allclose(probs32, probs_ref, atol=1e-5, rtol=1e-5), "f32 probs mismatch"

    # 2) bf16 MXU operands + f32 accumulation (default production path) — relaxed tol.
    out_bf, probs_bf = block_forward(x, params, n_heads=n_heads)
    jax.block_until_ready(out_bf)
    assert jnp.allclose(out_bf, out_ref, atol=5e-2, rtol=5e-2), "bf16 output mismatch"
    assert jnp.allclose(probs_bf, probs_ref, atol=2e-2, rtol=2e-2), "bf16 probs mismatch"

    print("KERNEL_OK")
</pallas_src>

<mosaic_0001>
module attributes {stable_mosaic.version = 11 : i64} {
  func.func @attention_block_kernel(%arg0: i32, %arg1: memref<1x8x32xf32, #tpu.memory_space<vmem>>, %arg2: memref<1x32xf32, #tpu.memory_space<vmem>>, %arg3: memref<1x32xf32, #tpu.memory_space<vmem>>, %arg4: memref<32x96xf32, #tpu.memory_space<vmem>>, %arg5: memref<1x96xf32, #tpu.memory_space<vmem>>, %arg6: memref<32x32xf32, #tpu.memory_space<vmem>>, %arg7: memref<1x32xf32, #tpu.memory_space<vmem>>, %arg8: memref<1x8x32xf32, #tpu.memory_space<vmem>>, %arg9: memref<1x4x8x8xf32, #tpu.memory_space<vmem>>) attributes {dimension_semantics = [#tpu.dimension_semantics<parallel>], iteration_bounds = array<i64: 2>, scalar_prefetch = 0 : i64, scratch_operands = 0 : i64, tpu.core_type = #tpu.core_type<tc>, window_params = [{transform_indices = @transform_0, window_bounds = array<i64: 1, 8, 32>}, {pipeline_mode = #tpu.pipeline_mode<synchronous>, transform_indices = @transform_1, window_bounds = array<i64: 1, 32>}, {pipeline_mode = #tpu.pipeline_mode<synchronous>, transform_indices = @transform_2, window_bounds = array<i64: 1, 32>}, {pipeline_mode = #tpu.pipeline_mode<synchronous>, transform_indices = @transform_3, window_bounds = array<i64: 32, 96>}, {pipeline_mode = #tpu.pipeline_mode<synchronous>, transform_indices = @transform_4, window_bounds = array<i64: 1, 96>}, {pipeline_mode = #tpu.pipeline_mode<synchronous>, transform_indices = @transform_5, window_bounds = array<i64: 32, 32>}, {pipeline_mode = #tpu.pipeline_mode<synchronous>, transform_indices = @transform_6, window_bounds = array<i64: 1, 32>}, {transform_indices = @transform_7, window_bounds = array<i64: 1, 8, 32>}, {transform_indices = @transform_8, window_bounds = array<i64: 1, 4, 8, 8>}]} {
    %c0 = arith.constant 0 : index
    %c0_0 = arith.constant 0 : index
    %c0_1 = arith.constant 0 : index
    %0 = vector.load %arg1[%c0, %c0_0, %c0_1] : memref<1x8x32xf32, #tpu.memory_space<vmem>>, vector<1x8x32xf32>
    %1 = vector.shape_cast %0 : vector<1x8x32xf32> to vector<8x32xf32>
    %c0_2 = arith.constant 0 : index
    %c0_3 = arith.constant 0 : index
    %2 = vector.load %arg2[%c0_2, %c0_3] : memref<1x32xf32, #tpu.memory_space<vmem>>, vector<1x32xf32>
    %c0_4 = arith.constant 0 : index
    %c0_5 = arith.constant 0 : index
    %3 = vector.load %arg3[%c0_4, %c0_5] : memref<1x32xf32, #tpu.memory_space<vmem>>, vector<1x32xf32>
    %cst = arith.constant dense<0.000000e+00> : vector<8xf32>
    %4 = vector.multi_reduction <add>, %1, %cst [1] : vector<8x32xf32> to vector<8xf32>
    %5 = vector.shape_cast %4 : vector<8xf32> to vector<8x1xf32>
    %cst_6 = arith.constant 3.200000e+01 : f32
    %6 = vector.broadcast %cst_6 : f32 to vector<8x1xf32>
    %7 = arith.divf %5, %6 : vector<8x1xf32>
    %8 = vector.broadcast %7 : vector<8x1xf32> to vector<8x32xf32>
    %9 = arith.subf %1, %8 : vector<8x32xf32>
    %10 = arith.mulf %9, %9 : vector<8x32xf32>
    %cst_7 = arith.constant dense<0.000000e+00> : vector<8xf32>
    %11 = vector.multi_reduction <add>, %10, %cst_7 [1] : vector<8x32xf32> to vector<8xf32>
    %12 = vector.shape_cast %11 : vector<8xf32> to vector<8x1xf32>
    %cst_8 = arith.constant 3.200000e+01 : f32
    %13 = vector.broadcast %cst_8 : f32 to vector<8x1xf32>
    %14 = arith.divf %12, %13 : vector<8x1xf32>
    %15 = vector.broadcast %7 : vector<8x1xf32> to vector<8x32xf32>
    %16 = arith.subf %1, %15 : vector<8x32xf32>
    %cst_9 = arith.constant 9.99999997E-7 : f32
    %17 = vector.broadcast %cst_9 : f32 to vector<8x1xf32>
    %18 = arith.addf %14, %17 : vector<8x1xf32>
    %19 = math.rsqrt %18 : vector<8x1xf32>
    %20 = vector.broadcast %19 : vector<8x1xf32> to vector<8x32xf32>
    %21 = arith.mulf %16, %20 : vector<8x32xf32>
    %22 = vector.broadcast %2 : vector<1x32xf32> to vector<8x32xf32>
    %23 = arith.mulf %21, %22 : vector<8x32xf32>
    %24 = vector.broadcast %3 : vector<1x32xf32> to vector<8x32xf32>
    %25 = arith.addf %23, %24 : vector<8x32xf32>
    %c0_10 = arith.constant 0 : index
    %c0_11 = arith.constant 0 : index
    %26 = vector.load %arg4[%c0_10, %c0_11] : memref<32x96xf32, #tpu.memory_space<vmem>>, vector<32x96xf32>
    %cst_12 = arith.constant dense<0.000000e+00> : vector<8x96xf32>
    %27 = tpu.matmul %25, %26, %cst_12 {dimension_numbers = #tpu.dot_dimension_numbers<[1], [0], [0], [1], [0, 0, 1, 1], [], []>} : vector<8x32xf32>, vector<32x96xf32>, vector<8x96xf32> -> vector<8x96xf32>
    %c0_13 = arith.constant 0 : index
    %c0_14 = arith.constant 0 : index
    %28 = vector.load %arg5[%c0_13, %c0_14] : memref<1x96xf32, #tpu.memory_space<vmem>>, vector<1x96xf32>
    %29 = vector.broadcast %28 : vector<1x96xf32> to vector<8x96xf32>
    %30 = arith.addf %27, %29 : vector<8x96xf32>
    %31 = vector.extract_strided_slice %30 {offsets = [0, 0], sizes = [8, 8], strides = [1, 1]} : vector<8x96xf32> to vector<8x8xf32>
    %cst_15 = arith.constant 0.353553385 : f32
    %32 = vector.broadcast %cst_15 : f32 to vector<8x8xf32>
    %33 = arith.mulf %31, %32 : vector<8x8xf32>
    %34 = vector.extract_strided_slice %30 {offsets = [0, 32], sizes = [8, 8], strides = [1, 1]} : vector<8x96xf32> to vector<8x8xf32>
    %35 = vector.extract_strided_slice %30 {offsets = [0, 64], sizes = [8, 8], strides = [1, 1]} : vector<8x96xf32> to vector<8x8xf32>
    %cst_16 = arith.constant dense<0.000000e+00> : vector<8x8xf32>
    %36 = tpu.matmul %33, %34, %cst_16 {dimension_numbers = #tpu.dot_dimension_numbers<[1], [1], [0], [0], [0, 0, 1, 0], [], []>} : vector<8x8xf32>, vector<8x8xf32>, vector<8x8xf32> -> vector<8x8xf32>
    %cst_17 = arith.constant dense<0xFF800000> : vector<8xf32>
    %37 = vector.multi_reduction <maximumf>, %36, %cst_17 [1] : vector<8x8xf32> to vector<8xf32>
    %38 = vector.shape_cast %37 : vector<8xf32> to vector<8x1xf32>
    %39 = vector.broadcast %38 : vector<8x1xf32> to vector<8x8xf32>
    %40 = arith.subf %36, %39 : vector<8x8xf32>
    %41 = math.exp %40 : vector<8x8xf32>
    %cst_18 = arith.constant dense<0.000000e+00> : vector<8xf32>
    %42 = vector.multi_reduction <add>, %41, %cst_18 [1] : vector<8x8xf32> to vector<8xf32>
    %43 = vector.shape_cast %42 : vector<8xf32> to vector<8x1xf32>
    %cst_19 = arith.constant 1.000000e+00 : f32
    %44 = vector.broadcast %cst_19 : f32 to vector<8x1xf32>
    %45 = arith.divf %44, %43 : vector<8x1xf32>
    %46 = vector.broadcast %45 : vector<8x1xf32> to vector<8x8xf32>
    %47 = arith.mulf %41, %46 : vector<8x8xf32>
    %c0_20 = arith.constant 0 : index
    %c0_21 = arith.constant 0 : index
    %c0_22 = arith.constant 0 : index
    %c0_23 = arith.constant 0 : index
    %48 = vector.load %arg9[%c0_20, %c0_21, %c0_22, %c0_23] : memref<1x4x8x8xf32, #tpu.memory_space<vmem>>, vector<1x1x8x8xf32>
    %49 = vector.shape_cast %48 : vector<1x1x8x8xf32> to vector<8x8xf32>
    %50 = vector.shape_cast %47 : vector<8x8xf32> to vector<1x1x8x8xf32>
    tpu.vector_store %arg9[%c0_20, %c0_21, %c0_22, %c0_23], %50 {strides = array<i32>} : memref<1x4x8x8xf32, #tpu.memory_space<vmem>>, vector<1x1x8x8xf32>,
    %cst_24 = arith.constant dense<0.000000e+00> : vector<8x8xf32>
    %51 = tpu.matmul %47, %35, %cst_24 {dimension_numbers = #tpu.dot_dimension_numbers<[1], [0], [0], [1], [0, 0, 1, 1], [], []>} : vector<8x8xf32>, vector<8x8xf32>, vector<8x8xf32> -> vector<8x8xf32>
    %52 = vector.extract_strided_slice %30 {offsets = [0, 8], sizes = [8, 8], strides = [1, 1]} : vector<8x96xf32> to vector<8x8xf32>
    %cst_25 = arith.constant 0.353553385 : f32
    %53 = vector.broadcast %cst_25 : f32 to vector<8x8xf32>
    %54 = arith.mulf %52, %53 : vector<8x8xf32>
    %55 = vector.extract_strided_slice %30 {offsets = [0, 40], sizes = [8, 8], strides = [1, 1]} : vector<8x96xf32> to vector<8x8xf32>
    %56 = vector.extract_strided_slice %30 {offsets = [0, 72], sizes = [8, 8], strides = [1, 1]} : vector<8x96xf32> to vector<8x8xf32>
    %cst_26 = arith.constant dense<0.000000e+00> : vector<8x8xf32>
    %57 = tpu.matmul %54, %55, %cst_26 {dimension_numbers = #tpu.dot_dimension_numbers<[1], [1], [0], [0], [0, 0, 1, 0], [], []>} : vector<8x8xf32>, vector<8x8xf32>, vector<8x8xf32> -> vector<8x8xf32>
    %cst_27 = arith.constant dense<0xFF800000> : vector<8xf32>
    %58 = vector.multi_reduction <maximumf>, %57, %cst_27 [1] : vector<8x8xf32> to vector<8xf32>
    %59 = vector.shape_cast %58 : vector<8xf32> to vector<8x1xf32>
    %60 = vector.broadcast %59 : vector<8x1xf32> to vector<8x8xf32>
    %61 = arith.subf %57, %60 : vector<8x8xf32>
    %62 = math.exp %61 : vector<8x8xf32>
    %cst_28 = arith.constant dense<0.000000e+00> : vector<8xf32>
    %63 = vector.multi_reduction <add>, %62, %cst_28 [1] : vector<8x8xf32> to vector<8xf32>
    %64 = vector.shape_cast %63 : vector<8xf32> to vector<8x1xf32>
    %cst_29 = arith.constant 1.000000e+00 : f32
    %65 = vector.broadcast %cst_29 : f32 to vector<8x1xf32>
    %66 = arith.divf %65, %64 : vector<8x1xf32>
    %67 = vector.broadcast %66 : vector<8x1xf32> to vector<8x8xf32>
    %68 = arith.mulf %62, %67 : vector<8x8xf32>
    %c0_30 = arith.constant 0 : index
    %c1 = arith.constant 1 : index
    %c0_31 = arith.constant 0 : index
    %c0_32 = arith.constant 0 : index
    %69 = vector.load %arg9[%c0_30, %c1, %c0_31, %c0_32] : memref<1x4x8x8xf32, #tpu.memory_space<vmem>>, vector<1x1x8x8xf32>
    %70 = vector.shape_cast %69 : vector<1x1x8x8xf32> to vector<8x8xf32>
    %71 = vector.shape_cast %68 : vector<8x8xf32> to vector<1x1x8x8xf32>
    tpu.vector_store %arg9[%c0_30, %c1, %c0_31, %c0_32], %71 {strides = array<i32>} : memref<1x4x8x8xf32, #tpu.memory_space<vmem>>, vector<1x1x8x8xf32>,
    %cst_33 = arith.constant dense<0.000000e+00> : vector<8x8xf32>
    %72 = tpu.matmul %68, %56, %cst_33 {dimension_numbers = #tpu.dot_dimension_numbers<[1], [0], [0], [1], [0, 0, 1, 1], [], []>} : vector<8x8xf32>, vector<8x8xf32>, vector<8x8xf32> -> vector<8x8xf32>
    %73 = vector.extract_strided_slice %30 {offsets = [0, 16], sizes = [8, 8], strides = [1, 1]} : vector<8x96xf32> to vector<8x8xf32>
    %cst_34 = arith.constant 0.353553385 : f32
    %74 = vector.broadcast %cst_34 : f32 to vector<8x8xf32>
    %75 = arith.mulf %73, %74 : vector<8x8xf32>
    %76 = vector.extract_strided_slice %30 {offsets = [0, 48], sizes = [8, 8], strides = [1, 1]} : vector<8x96xf32> to vector<8x8xf32>
    %77 = vector.extract_strided_slice %30 {offsets = [0, 80], sizes = [8, 8], strides = [1, 1]} : vector<8x96xf32> to vector<8x8xf32>
    %cst_35 = arith.constant dense<0.000000e+00> : vector<8x8xf32>
    %78 = tpu.matmul %75, %76, %cst_35 {dimension_numbers = #tpu.dot_dimension_numbers<[1], [1], [0], [0], [0, 0, 1, 0], [], []>} : vector<8x8xf32>, vector<8x8xf32>, vector<8x8xf32> -> vector<8x8xf32>
    %cst_36 = arith.constant dense<0xFF800000> : vector<8xf32>
    %79 = vector.multi_reduction <maximumf>, %78, %cst_36 [1] : vector<8x8xf32> to vector<8xf32>
    %80 = vector.shape_cast %79 : vector<8xf32> to vector<8x1xf32>
    %81 = vector.broadcast %80 : vector<8x1xf32> to vector<8x8xf32>
    %82 = arith.subf %78, %81 : vector<8x8xf32>
    %83 = math.exp %82 : vector<8x8xf32>
    %cst_37 = arith.constant dense<0.000000e+00> : vector<8xf32>
    %84 = vector.multi_reduction <add>, %83, %cst_37 [1] : vector<8x8xf32> to vector<8xf32>
    %85 = vector.shape_cast %84 : vector<8xf32> to vector<8x1xf32>
    %cst_38 = arith.constant 1.000000e+00 : f32
    %86 = vector.broadcast %cst_38 : f32 to vector<8x1xf32>
    %87 = arith.divf %86, %85 : vector<8x1xf32>
    %88 = vector.broadcast %87 : vector<8x1xf32> to vector<8x8xf32>
    %89 = arith.mulf %83, %88 : vector<8x8xf32>
    %c0_39 = arith.constant 0 : index
    %c2 = arith.constant 2 : index
    %c0_40 = arith.constant 0 : index
    %c0_41 = arith.constant 0 : index
    %90 = vector.load %arg9[%c0_39, %c2, %c0_40, %c0_41] : memref<1x4x8x8xf32, #tpu.memory_space<vmem>>, vector<1x1x8x8xf32>
    %91 = vector.shape_cast %90 : vector<1x1x8x8xf32> to vector<8x8xf32>
    %92 = vector.shape_cast %89 : vector<8x8xf32> to vector<1x1x8x8xf32>
    tpu.vector_store %arg9[%c0_39, %c2, %c0_40, %c0_41], %92 {strides = array<i32>} : memref<1x4x8x8xf32, #tpu.memory_space<vmem>>, vector<1x1x8x8xf32>,
    %cst_42 = arith.constant dense<0.000000e+00> : vector<8x8xf32>
    %93 = tpu.matmul %89, %77, %cst_42 {dimension_numbers = #tpu.dot_dimension_numbers<[1], [0], [0], [1], [0, 0, 1, 1], [], []>} : vector<8x8xf32>, vector<8x8xf32>, vector<8x8xf32> -> vector<8x8xf32>
    %94 = vector.extract_strided_slice %30 {offsets = [0, 24], sizes = [8, 8], strides = [1, 1]} : vector<8x96xf32> to vector<8x8xf32>
    %cst_43 = arith.constant 0.353553385 : f32
    %95 = vector.broadcast %cst_43 : f32 to vector<8x8xf32>
    %96 = arith.mulf %94, %95 : vector<8x8xf32>
    %97 = vector.extract_strided_slice %30 {offsets = [0, 56], sizes = [8, 8], strides = [1, 1]} : vector<8x96xf32> to vector<8x8xf32>
    %98 = vector.extract_strided_slice %30 {offsets = [0, 88], sizes = [8, 8], strides = [1, 1]} : vector<8x96xf32> to vector<8x8xf32>
    %cst_44 = arith.constant dense<0.000000e+00> : vector<8x8xf32>
    %99 = tpu.matmul %96, %97, %cst_44 {dimension_numbers = #tpu.dot_dimension_numbers<[1], [1], [0], [0], [0, 0, 1, 0], [], []>} : vector<8x8xf32>, vector<8x8xf32>, vector<8x8xf32> -> vector<8x8xf32>
    %cst_45 = arith.constant dense<0xFF800000> : vector<8xf32>
    %100 = vector.multi_reduction <maximumf>, %99, %cst_45 [1] : vector<8x8xf32> to vector<8xf32>
    %101 = vector.shape_cast %100 : vector<8xf32> to vector<8x1xf32>
    %102 = vector.broadcast %101 : vector<8x1xf32> to vector<8x8xf32>
    %103 = arith.subf %99, %102 : vector<8x8xf32>
    %104 = math.exp %103 : vector<8x8xf32>
    %cst_46 = arith.constant dense<0.000000e+00> : vector<8xf32>
    %105 = vector.multi_reduction <add>, %104, %cst_46 [1] : vector<8x8xf32> to vector<8xf32>
    %106 = vector.shape_cast %105 : vector<8xf32> to vector<8x1xf32>
    %cst_47 = arith.constant 1.000000e+00 : f32
    %107 = vector.broadcast %cst_47 : f32 to vector<8x1xf32>
    %108 = arith.divf %107, %106 : vector<8x1xf32>
    %109 = vector.broadcast %108 : vector<8x1xf32> to vector<8x8xf32>
    %110 = arith.mulf %104, %109 : vector<8x8xf32>
    %c0_48 = arith.constant 0 : index
    %c3 = arith.constant 3 : index
    %c0_49 = arith.constant 0 : index
    %c0_50 = arith.constant 0 : index
    %111 = vector.load %arg9[%c0_48, %c3, %c0_49, %c0_50] : memref<1x4x8x8xf32, #tpu.memory_space<vmem>>, vector<1x1x8x8xf32>
    %112 = vector.shape_cast %111 : vector<1x1x8x8xf32> to vector<8x8xf32>
    %113 = vector.shape_cast %110 : vector<8x8xf32> to vector<1x1x8x8xf32>
    tpu.vector_store %arg9[%c0_48, %c3, %c0_49, %c0_50], %113 {strides = array<i32>} : memref<1x4x8x8xf32, #tpu.memory_space<vmem>>, vector<1x1x8x8xf32>,
    %cst_51 = arith.constant dense<0.000000e+00> : vector<8x8xf32>
    %114 = tpu.matmul %110, %98, %cst_51 {dimension_numbers = #tpu.dot_dimension_numbers<[1], [0], [0], [1], [0, 0, 1, 1], [], []>} : vector<8x8xf32>, vector<8x8xf32>, vector<8x8xf32> -> vector<8x8xf32>
    %115 = tpu.concatenate %51, %72, %93, %114 in 1 : vector<8x8xf32>, vector<8x8xf32>, vector<8x8xf32>, vector<8x8xf32> -> vector<8x32xf32>
    %c0_52 = arith.constant 0 : index
    %c0_53 = arith.constant 0 : index
    %116 = vector.load %arg6[%c0_52, %c0_53] : memref<32x32xf32, #tpu.memory_space<vmem>>, vector<32x32xf32>
    %cst_54 = arith.constant dense<0.000000e+00> : vector<8x32xf32>
    %117 = tpu.matmul %115, %116, %cst_54 {dimension_numbers = #tpu.dot_dimension_numbers<[1], [0], [0], [1], [0, 0, 1, 1], [], []>} : vector<8x32xf32>, vector<32x32xf32>, vector<8x32xf32> -> vector<8x32xf32>
    %c0_55 = arith.constant 0 : index
    %c0_56 = arith.constant 0 : index
    %118 = vector.load %arg7[%c0_55, %c0_56] : memref<1x32xf32, #tpu.memory_space<vmem>>, vector<1x32xf32>
    %119 = vector.broadcast %118 : vector<1x32xf32> to vector<8x32xf32>
    %120 = arith.addf %117, %119 : vector<8x32xf32>
    %121 = arith.addf %120, %1 : vector<8x32xf32>
    %c0_57 = arith.constant 0 : index
    %c0_58 = arith.constant 0 : index
    %c0_59 = arith.constant 0 : index
    %122 = vector.load %arg8[%c0_57, %c0_58, %c0_59] : memref<1x8x32xf32, #tpu.memory_space<vmem>>, vector<1x8x32xf32>
    %123 = vector.shape_cast %122 : vector<1x8x32xf32> to vector<8x32xf32>
    %124 = vector.shape_cast %121 : vector<8x32xf32> to vector<1x8x32xf32>
    tpu.vector_store %arg8[%c0_57, %c0_58, %c0_59], %124 {strides = array<i32>} : memref<1x8x32xf32, #tpu.memory_space<vmem>>, vector<1x8x32xf32>,
    return
  }
  func.func @transform_0(%arg0: i32) -> (i32, i32, i32) {
    %c0_i32 = arith.constant 0 : i32
    %c0_i32_0 = arith.constant 0 : i32
    %c0_i32_1 = arith.constant 0 : i32
    return %arg0, %c0_i32, %c0_i32_0 : i32, i32, i32
  }
  func.func @transform_1(%arg0: i32) -> (i32, i32) {
    %c0_i32 = arith.constant 0 : i32
    %c0_i32_0 = arith.constant 0 : i32
    %c0_i32_1 = arith.constant 0 : i32
    return %c0_i32, %c0_i32_0 : i32, i32
  }
  func.func @transform_2(%arg0: i32) -> (i32, i32) {
    %c0_i32 = arith.constant 0 : i32
    %c0_i32_0 = arith.constant 0 : i32
    %c0_i32_1 = arith.constant 0 : i32
    return %c0_i32, %c0_i32_0 : i32, i32
  }
  func.func @transform_3(%arg0: i32) -> (i32, i32) {
    %c0_i32 = arith.constant 0 : i32
    %c0_i32_0 = arith.constant 0 : i32
    %c0_i32_1 = arith.constant 0 : i32
    return %c0_i32, %c0_i32_0 : i32, i32
  }
  func.func @transform_4(%arg0: i32) -> (i32, i32) {
    %c0_i32 = arith.constant 0 : i32
    %c0_i32_0 = arith.constant 0 : i32
    %c0_i32_1 = arith.constant 0 : i32
    return %c0_i32, %c0_i32_0 : i32, i32
  }
  func.func @transform_5(%arg0: i32) -> (i32, i32) {
    %c0_i32 = arith.constant 0 : i32
    %c0_i32_0 = arith.constant 0 : i32
    %c0_i32_1 = arith.constant 0 : i32
    return %c0_i32, %c0_i32_0 : i32, i32
  }
  func.func @transform_6(%arg0: i32) -> (i32, i32) {
    %c0_i32 = arith.constant 0 : i32
    %c0_i32_0 = arith.constant 0 : i32
    %c0_i32_1 = arith.constant 0 : i32
    return %c0_i32, %c0_i32_0 : i32, i32
  }
  func.func @transform_7(%arg0: i32) -> (i32, i32, i32) {
    %c0_i32 = arith.constant 0 : i32
    %c0_i32_0 = arith.constant 0 : i32
    %c0_i32_1 = arith.constant 0 : i32
    return %arg0, %c0_i32, %c0_i32_0 : i32, i32, i32
  }
  func.func @transform_8(%arg0: i32) -> (i32, i32, i32, i32) {
    %c0_i32 = arith.constant 0 : i32
    %c0_i32_0 = arith.constant 0 : i32
    %c0_i32_1 = arith.constant 0 : i32
    %c0_i32_2 = arith.constant 0 : i32
    return %arg0, %c0_i32, %c0_i32_0, %c0_i32_1 : i32, i32, i32, i32
  }
}

</mosaic_0001>

<bundles_post_ra>
// kernel: tpu_custom_call.1
= control target key start
LH: loop header
LB: loop body
LE: loop exit
PB: predicated region body
PF: predicated region fallthrough
CT: control target
= control target key end

     0   :  { %s2289_s0 = inlined_call_operand.hbm [shape: f32[2,8,32], index: 0, kind: input, shape index: {}]   ;;  %s2290_s1 = inlined_call_operand.vmem [shape: f32[1,32], index: 1, kind: input, shape index: {}]   ;;  %s2291_s2 = inlined_call_operand.vmem [shape: f32[1,32], index: 2, kind: input, shape index: {}]   ;;  %s2292_s3 = inlined_call_operand.hbm [shape: f32[32,96], index: 3, kind: input, shape index: {}]   ;;  %s2293_s4 = inlined_call_operand.vmem [shape: f32[1,96], index: 4, kind: input, shape index: {}]   ;;  %s2294_s5 = inlined_call_operand.hbm [shape: f32[32,32], index: 5, kind: input, shape index: {}]   ;;  %s2295_s6 = inlined_call_operand.vmem [shape: f32[1,32], index: 6, kind: input, shape index: {}]   ;;  %s2296_s7 = inlined_call_operand.hbm [shape: f32[2,8,32], index: 7, kind: output, shape index: {0}]   ;;  %s2297_s8 = inlined_call_operand.hbm [shape: f32[2,4,8,8], index: 8, kind: output, shape index: {1}]  }
   0x1   :  { %2302 = sst [smem:[#allocation15_spill]] %s2289_s0 }
   0x2   :  { %2303 = sst [smem:[#allocation16_spill]] %s2290_s1 }
   0x3   :  { %14 = vsyncpa [#allocation3], 0 }
   0x4   :  { %16 = vsyncpa [#allocation3 + $0x1], 0 }
   0x5   :  { %17 = vsyncpa [#allocation6], 0 }
   0x6   :  { %18 = vsyncpa [#allocation4], 0 }
   0x7   :  { %20 = vsyncpa [#allocation4 + $0x1], 0 }
   0x8   :  { %21 = vsyncpa [#allocation10], 0 }
   0x9   :  { %23 = vsyncpa [#allocation10 + $0x1], 0  ;;  %s1921_s27 = smov 0   ;;  %s1923_s28 = smov 0  }
   0xa   :  { %s1925_s29 = smov 0   ;;  %s1927_s30 = smov 0  }
   0xb LB: > { %s1942_s9 = sadd.s32 4294967295, %s1849_s30   ;;  %s1409_s10 = sadd.s32 4294967294, %s1849_s30   ;;  %s1849_s30 = sphi %s1927_s30, %s2323_s30   ;;  %s1845_s29 = sphi %s1925_s29, %s2322_s29   ;;  %s1841_s28 = sphi %s1923_s28, %s2321_s28   ;;  %s1837_s27 = sphi %s1921_s27, %s2320_s27  }
   0xc   : > { %p49_p0 = scmp.ne.s32.totalorder %s1841_s28, %s1837_s27  ;;  %p2298_p1 = scmp.eq.s32.totalorder %s1942_s9, 0 }
   0xd   : > { %p205_p3 = scmp.eq.s32.totalorder %s1409_s10, 1  ;;  %p1410_p5 = scmp.ge.s32.totalorder %s1849_s30, 1 }
   0xe   : > { %p1951_p4 = por %p2298_p1, %p49_p0  ;;  %p238_p7 = scmp.lt.s32.totalorder %s1849_s30, 3 }
   0xf   : > { %p1956_p6 = por %p205_p3, %p49_p0  ;;  %s1851_s14 = smov [#allocation5]  }
  0x10   : > { %s2304_s11 = scalar_select %p1951_p4, 1, 0 }
  0x11   : > { %s2305_s12 = scalar_select %p1956_p6, 1, 0 }
  0x12   : > { %p1961_p8 = pnand %p1410_p5, %p238_p7  ;;  %s256_s15 = sshll.u32 %s1851_s14, 4  ;;  %s1965_s15 = int_to_ptr.vmem [resolvable:$true] %s256_s15 }
  0x13   : > { %s1852_s17 = smov [#allocation7]   ;;  %s1661_s21 = scalar_lea.hbm %s2292_s3, 512 }
  0x14   : > { %p1565_p9 = pneg %p1961_p8  ;;  %s272_s18 = sshll.u32 %s1852_s17, 4  ;;  %s1976_s18 = int_to_ptr.vmem [resolvable:$true] %s272_s18 }
  0x15   : > { %p1662_p12 = scmp.ne.s32.totalorder %s2292_s3, %s1661_s21  ;;  %p1668_p5 = scmp.lt.u32.totalorder %s1661_s21, %s2292_s3 }
  0x16   : > { %p1972_p11 = pnand %p1565_p9, %p2298_p1 }
  0x18   : > { %p1663_p13 = pneg %p1972_p11 }
  0x1a   : > { %p1664_p0 = pnand %p1663_p13, %p1662_p12 }
  0x1c   : > { %p1665_p3 = pneg %p1664_p0 }
  0x1e   : > { %p1670_p7 = pnand %p1668_p5, %p1665_p3 }
  0x20   : > { %1673 = shalt.err (!%p1670_p7)
}
  0x21   : > { %s1674_s26 = scalar_lea.vmem %s1965_s15, 512  ;;  %p1682_p2 = scmp.lt.s32.totalorder %s1965_s15, %s1965_s15 }
  0x22   : > { %p1675_p9 = scmp.ne.s32.totalorder %s1965_s15, %s1674_s26  ;;  %p1683_p12 = scmp.lt.s32.totalorder %s1674_s26, %s1674_s26 }
  0x24   : > { %p1677_p10 = pnand %p1675_p9, %p1663_p13  ;;  %p1684_p0 = por %p1683_p12, %p1682_p2 }
  0x26   : > { %p1678_p1 = pneg %p1677_p10 }
  0x28   : > { %p1685_p6 = pnand %p1684_p0, %p1678_p1 }
  0x2a   : > { %1688 = shalt.err (!%p1685_p6)
}
  0x2b   : > { %s1853_s10 = smov 128   ;;  %s1854_s14 = smov 8  }
  0x2c   : > { %1568 = dma.hbm_to_vmem [thread:$0]  (!%p1972_p11), %s2292_s3, 512, %s1965_s15, [#allocation6], %s1853_s10, %s1853_s10, %s1854_s14  }
  0x2d   : > { %s1689_s22 = scalar_lea.hbm %s2294_s5, 512 }
  0x2e   : > { %p1690_p2 = scmp.ne.s32.totalorder %s2294_s5, %s1689_s22  ;;  %p1696_p10 = scmp.lt.u32.totalorder %s1689_s22, %s2294_s5 }
  0x30   : > { %p1692_p1 = pnand %p1690_p2, %p1663_p13 }
  0x32   : > { %p1693_p6 = pneg %p1692_p1 }
  0x34   : > { %p1698_p3 = pnand %p1696_p10, %p1693_p6 }
  0x36   : > { %1701 = shalt.err (!%p1698_p3)
}
  0x37   : > { %s1702_s15 = scalar_lea.vmem %s1976_s18, 512  ;;  %p1710_p12 = scmp.lt.s32.totalorder %s1976_s18, %s1976_s18 }
  0x38   : > { %p1703_p5 = scmp.ne.s32.totalorder %s1976_s18, %s1702_s15  ;;  %p1711_p0 = scmp.lt.s32.totalorder %s1702_s15, %s1702_s15 }
  0x3a   : > { %p1705_p7 = pnand %p1703_p5, %p1663_p13  ;;  %p1712_p2 = por %p1711_p0, %p1710_p12 }
  0x3c   : > { %p1706_p9 = pneg %p1705_p7 }
  0x3e   : > { %p1713_p1 = pnand %p1712_p2, %p1706_p9 }
  0x40   : > { %1716 = shalt.err (!%p1713_p1)
}
  0x41   : > { %1571 = dma.hbm_to_vmem [thread:$0]  (!%p1972_p11), %s2294_s5, 512, %s1976_s18, [#allocation6], %s1853_s10, %s1853_s10, %s1854_s14  }
  0x42   : > { %s2031_s20 = sadd.s32 1, %s1849_s30   ;;  %s36_s16 = sadd.s32 1, %s1845_s29 }
  0x43   : > { %s33_s21 = ssub.s32 %s1849_s30, %s2031_s20  ;;  %p43_p13 = scmp.ne.s32.totalorder %s1845_s29, %s1841_s28 }
  0x44   : > { %p34_p6 = scmp.eq.s32.totalorder %s33_s21, 0  ;;  %p44_p10 = scmp.eq.s32.totalorder %s1849_s30, 0 }
  0x45   : > { %p2308_p3 = scmp.eq.s32.totalorder %s1942_s9, 1  ;;  %p1585_p7 = scmp.lt.s32.totalorder %s1849_s30, 2 }
  0x46   : > { %s2047_s23 = scalar_select %p34_p6, %s1845_s29, %s36_s16  }
  0x47   : > { %p2041_p5 = por %p2308_p3, %p43_p13  ;;  %p45_p9 = por %p44_p10, %p43_p13 }
  0x48   : > { %s289_s24 = sand.u32 1, %s1845_s29   ;;  %s1415_s18 = sshll.u32 %s1849_s30, 7 }
  0x49   : > { %s2309_s22 = scalar_select %p2041_p5, 1, 0 }
  0x4a   : > { %s1414_s25 = sshll.u32 %s289_s24, 3  ;;  %s2310_s0 = sld [smem:[#allocation15_spill]] }
  0x4b   : > { %s293_s15 = scalar_lea.vmem [#allocation2], %s1414_s25  ;;  %p2058_p11 = pnand %p1585_p7, %p45_p9 }
  0x4c   : > { %s300_s17 = sshll.u32 %s293_s15, 4  ;;  %s290_s16 = scalar_lea.sflag [#allocation3], %s289_s24  ;;  %s2056_s17 = int_to_ptr.vmem [resolvable:$true] %s300_s17 }
  0x4d   : > { %p1719_p0 = pneg %p2058_p11 }
  0x50   : > { %s2054_s26 = scalar_lea.hbm %s2310_s0, %s1415_s18  ;;  %s1722_s10 = scalar_lea.hbm %s2310_s0, 256 }
  0x51   : > { %s1717_s21 = scalar_lea.hbm %s2054_s26, 128  ;;  %p1723_p13 = scmp.lt.u32.totalorder %s2054_s26, %s2310_s0 }
  0x52   : > { %p1718_p12 = scmp.ne.s32.totalorder %s2054_s26, %s1717_s21  ;;  %p1724_p6 = scmp.lt.u32.totalorder %s1722_s10, %s1717_s21 }
  0x53   : > { %p1726_p3 = scmp.lt.u32.totalorder %s1717_s21, %s2054_s26 }
  0x54   : > { %p1720_p2 = pnand %p1719_p0, %p1718_p12  ;;  %p1725_p10 = por %p1724_p6, %p1723_p13 }
  0x56   : > { %p1721_p1 = pneg %p1720_p2  ;;  %p1727_p7 = por %p1726_p3, %p1725_p10 }
  0x58   : > { %p1728_p9 = pnand %p1727_p7, %p1721_p1 }
  0x5a   : > { %1731 = shalt.err (!%p1728_p9)
}
  0x5b   : > { %s1732_s24 = scalar_lea.vmem %s2056_s17, 128  ;;  %s1855_s18 = smov [#allocation2]  }
  0x5c   : > { %p1733_p12 = scmp.ne.s32.totalorder %s2056_s17, %s1732_s24  ;;  %s1737_s25 = sshll.u32 %s1855_s18, 4  ;;  %s1738_s25 = int_to_ptr.vmem [resolvable:$false] %s1737_s25 }
  0x5d   : > { %s1739_s14 = scalar_lea.vmem %s1738_s25, 256  ;;  %p1740_p4 = scmp.lt.s32.totalorder %s2056_s17, %s1738_s25 }
  0x5e   : > { %p1735_p2 = pnand %p1733_p12, %p1719_p0  ;;  %p1741_p13 = scmp.lt.s32.totalorder %s1739_s14, %s1732_s24 }
  0x60   : > { %p1736_p5 = pneg %p1735_p2  ;;  %p1742_p6 = por %p1741_p13, %p1740_p4 }
  0x62   : > { %p1743_p10 = pnand %p1742_p6, %p1736_p5 }
  0x64   : > { %1746 = shalt.err (!%p1743_p10)
}
  0x65   : > { %1575 = dma.hbm_to_vmem [thread:$0]  (!%p2058_p11), %s2054_s26, 128, %s2056_s17, %s290_s16  }
  0x66   : > { %309 = sbr.rel (%p1961_p8) target bundleno = 2381 (0x94d), region = 48  ;;  %s2090_s21 = sand.u32 (!%p1961_p8), 1, %s1841_s28  }
  0x67   : > { %s2301_s10 = sshll.u32 (!%p1961_p8), %s2090_s21, 3  ;;  %s312_s15 = scalar_lea.sflag (!%p1961_p8), [#allocation3], %s2090_s21 }
  0x68   : > { %s315_s24 = scalar_lea.vmem (!%p1961_p8), [#allocation2], %s2301_s10  ;;  %p2312_p4 = scmp.ne.s32.totalorder (!%p1961_p8), %s2304_s11, 0 }
  0x6d   : > { %1820 = dma.done.wait (%p2312_p4), %s312_s15, 128  }
  0x6e   : > { %1822 = vsyncadd (%p2312_p4), %s312_s15, 4294967168  ;;  %p2313_p5 = scmp.eq.s32.totalorder %s1942_s9, 0 }
  0x70   : > { %1824 = dma.done.wait (%p2313_p5), [#allocation6], 1024   ;;  %p2314_p8 = pmov %p2313_p5 }
  0x71   : > { %vm364_vm0 = vcmask 261120   ;;  %v2104_v0 = vld [vmem:[%s315_s24] sm:$0xff]  ;;  %v393_v7 = vld [vmem:[#allocation5] sm:$0xff]  ;;  %v394_v8 = vld [vmem:[#allocation5 + $0x8] sm:$0xff]  ;;  %v1856_v10 = vmov 0.0|0.0   ;;  %vm1857_vm1 = vmmov 0  }
  0x72   : > { %1826 = vsyncadd (%p2314_p8), [#allocation6], 4294966272  ;;  %v365_v1 = vsel %vm364_vm0, %v2104_v0, 0.0  ;;  %v395_v9 = vld [vmem:[#allocation5 + $0x10] sm:$0xff]  ;;  %1539 = vmatprep.subr.bf16.mxu0 %v1856_v10  ;;  %v1540_v11 = vpack.c.bf16 %v394_v8, %v393_v7  ;;  %v396_v12 = vld [vmem:[#allocation5 + $0x18] sm:$0xff]  ;;  %v1858_v13 = vmov 0.0  }
  0x73   : > { %366 = vadd.xlane.f32.xlu0 %v365_v1  ;;  %1485 = vmatprep.mubr.msk.f32.mxu0 %vm1857_vm1, %v1858_v13  ;;  %v1543_v14 = vpack.c.bf16 %v396_v12, %v395_v9  ;;  %s2315_s1 = sld [smem:[#allocation16_spill]]  ;;  %v1423_v21 = vld [vmem:[%s2291_s2] ss:$0 sm:$0xff]  ;;  %s1859_s18 = smov 64   ;;  %vm481_vm2 = vcmask 64512   ;;  %vm1163_vm3 = vcmask 130048  }
  0x74   : > { %1488 = vmatprep.subr.mxu1 %v1858_v13  ;;  %1490 = vmatprep.mubr.msk.f32.mxu1 %vm1857_vm1, %v1858_v13  ;;  %v1424_v24 = vld [vmem:[%s2293_s4] ss:$0 sm:$0xff]  ;;  %s1860_s25 = smov 96   ;;  %s1861_s14 = smov 88   ;;  %vm1165_vm4 = vcmask 195584  }
  0x75   : > { %1541 = vmatpush3.bf16.msra.mxu0 %v1540_v11  ;;  %s1862_s15 = smov 120   ;;  %s1863_s24 = smov 80  }
  0x76   : > { %1542 = vmatprep.subr.bf16.mxu0 %v1856_v10  ;;  %s1864_s11 = smov 112   ;;  %s1865_s13 = smov 72  }
  0x77   : > { %s1866_s26 = smov 104   ;;  %s1421_s17 = sshll.u32 %s2090_s21, 5 }
  0x78   : > { %s2155_s19 = scalar_lea.vmem [#allocation9], %s1421_s17  ;;  %s1867_s16 = smov 48  }
  0x79   : > { %1544 = vmatpush3.bf16.msra.mxu0 %v1543_v14  ;;  %v1422_v19 = vld [vmem:[%s2315_s1] ss:$0 sm:$0xff]  ;;  %p2316_p0 = scmp.ne.s32.totalorder %s2309_s22, 0 }
  0x7a   : > { %1508 = vmatprep.subr.mxu0 %v1858_v13 }
 0x100   : > { %v367_v2 = vpop.xlane.xlu0 %366 }
 0x101   : > { %v369_v3 = vmul.f32 0.03125, %v367_v2 }
 0x103   : > { %v370_v4 = vsub.f32 %v2104_v0, %v369_v3 }
 0x105   : > { %v371_v5 = vmul.f32 %v370_v4, %v370_v4 }
 0x107   : > { %v372_v6 = vsel %vm364_vm0, %v371_v5, 0.0 }
 0x108   : > { %373 = vadd.xlane.f32.xlu0 %v372_v6 }
 0x195   : > { %v374_v15 = vpop.xlane.xlu0 %373 }
 0x196   : > { %v375_v16 = vmul.f32 0.03125, %v374_v15 }
 0x198   : > { %v376_v17 = vadd.f32 1e-06, %v375_v16 }
 0x19a   : > { %1643 = vrsqrt.f32 %v376_v17 }
 0x1a4   : > { %v1644_v18 = vpop.eup %1643 }
 0x1a5   : > { %v378_v20 = vmul.f32 %v1644_v18, %v370_v4 }
 0x1a7   : > { %v385_v22 = vmul.f32 %v1422_v19, %v378_v20 }
 0x1a9   : > { %v392_v23 = vadd.f32 %v1423_v21, %v385_v22 }
 0x1ab   : > { %1486 = vmatmul.mubr.msk.f32.vlgmr.msra.gmra.mrb[0].mxu0 %vm364_vm0, %v392_v23 }
 0x1ac   : > { %1510 = vmatprep.mubr.msk.f32.mxu0 %vm1857_vm1, %v1858_v13 }
 0x27e   : > { %v473_v25 = vpop.f32.mrb[0].mxu0 }
 0x27f   : > { %v2130_v26 = vadd.f32 %v1424_v24, %v473_v25  ;;  %v1487_v27 = vpop.f32.mrb[1].mxu0  ;;  %v1167_v25 = vld [vmem:[#allocation7] sm:$0xff] }
 0x281   : > { %570 = vrot.lane.b32.xlu0 %v2130_v26, %s1859_s18  ;;  %479 = vrot.lane.b32.xlu1 %v2130_v26, %s1860_s25  ;;  %v477_v28 = vmul.f32 0.35355338, %v2130_v26  ;;  %s1868_s18 = smov 56   ;;  %s1869_s25 = smov 40  }
 0x285   : > { %648 = vrot.lane.b32.xlu0 %v2130_v26, %s1861_s14  ;;  %s1870_s14 = smov 8  }
 0x289   : > { %646 = vrot.lane.b32.xlu0 %v477_v28, %s1862_s15  ;;  %s1871_s15 = smov 16  }
 0x2f3   : > { %v480_v29 = vpop.permute.xlu1 %479  ;;  %v571_v30 = vpop.permute.xlu0 %570 }
 0x2f4   : > { %1489 = vmatpush3.xpose.msk.msra.mxu1 %vm481_vm2, %v480_v29  ;;  %v1170_v29 = vld [vmem:[#allocation7 + $0x18] sm:$0xff] }
 0x2f5   : > { %1493 = vmatprep.subr.mxu1 %v1858_v13 }
 0x2f7   : > { %1491 = vmatmul.mubr.msk.f32.vlgmr.msra.gmra.mrb[0].mxu1 %vm481_vm2, %v477_v28  ;;  %v649_v40 = vpop.permute.xlu0 %648 }
 0x2f8   : > { %1494 = vmatpush3.msra.mxu1 %v571_v30  ;;  %1495 = vmatprep.mubr.msk.f32.mxu1 %vm1857_vm1, %v1858_v13 }
 0x2f9   : > { %1498 = vmatprep.subr.mxu1 %v1858_v13 }
 0x2fb   : > { %v647_v41 = vpop.permute.xlu0 %646 }
 0x3ca   : > { %v553_v31 = vpop.f32.mrb[0].mxu1 }
 0x3cb   : > { %v1492_v32 = vpop.f32.mrb[1].mxu1  ;;  %v557_v33 = vsel %vm481_vm2, %v553_v31, -inf }
 0x3cc   : > { %558 = vmax.xlane.f32.xlu1 %v557_v33 }
 0x3dd   : > { %816 = vrot.lane.b32.xlu1 %v2130_v26, %s1863_s24  ;;  %s1872_s24 = smov 24  }
 0x459   : > { %v559_v34 = vpop.xlane.xlu1 %558 }
 0x45a   : > { %v560_v35 = vsub.f32 %v553_v31, %v559_v34 }
 0x45c   : > { %v561_v36 = vmul.f32 1.442695, %v560_v35 }
 0x45d   : > { %v817_v37 = vpop.permute.xlu1 %816 }
 0x45e   : > { %1645 = vpow2.f32 %v561_v36  ;;  %1509 = vmatpush3.xpose.msk.msra.mxu0 %vm481_vm2, %v817_v37 }
 0x45f   : > { %1518 = vmatprep.subr.mxu0 %v1858_v13 }
 0x468   : > { %v1646_v38 = vpop.eup %1645 }
 0x469   : > { %v563_v39 = vsel %vm481_vm2, %v1646_v38, 0.0 }
 0x46a   : > { %564 = vadd.xlane.f32.xlu0 %v563_v39 }
 0x480   : > { %814 = vrot.lane.b32.xlu0 %v477_v28, %s1864_s11  ;;  %s1450_s11 = sshll.u32 %s1942_s9, 9 }
 0x484   : > { %984 = vrot.lane.b32.xlu0 %v2130_v26, %s1865_s13  ;;  %s1285_s13 = sshll.u32 %s2155_s19, 4  ;;  %s2207_s13 = int_to_ptr.vmem [resolvable:$true] %s1285_s13 }
 0x488   : > { %982 = vrot.lane.b32.xlu0 %v477_v28, %s1866_s26  ;;  %v1169_v28 = vld [vmem:[#allocation7 + $0x10] sm:$0xff] }
 0x489   : > { %v1549_v30 = vpack.c.bf16 %v1170_v29, %v1169_v28 }
 0x4f7   : > { %v565_v42 = vpop.xlane.xlu0 %564 }
 0x4f8   : > { %1647 = vrcp.f32 %v565_v42 }
 0x4fb   : > { %v815_v43 = vpop.permute.xlu0 %814 }
 0x4fc   : > { %1511 = vmatmul.mubr.msk.f32.vlgmr.msra.gmra.mrb[2].mxu0 %vm481_vm2, %v815_v43 }
 0x4fd   : > { %1520 = vmatprep.mubr.msk.f32.mxu0 %vm1857_vm1, %v1858_v13 }
 0x4ff   : > { %v985_v44 = vpop.permute.xlu0 %984 }
 0x500   : > { %1519 = vmatpush3.xpose.msk.msra.mxu0 %vm481_vm2, %v985_v44 }
 0x501   : > { %1545 = vmatprep.subr.bf16.mxu0 %v1856_v10 }
 0x502   : > { %v1648_v45 = vpop.eup %1647 }
 0x503   : > { %v568_v46 = vmul.f32 %v1648_v45, %v1646_v38  ;;  %v983_v47 = vpop.permute.xlu0 %982 }
 0x504   : > { %1521 = vmatmul.mubr.msk.f32.vlgmr.msra.gmra.mrb[4].mxu0 %vm481_vm2, %v983_v47 }
 0x505   : > { %569 = vst.msk [vmem:[%s2155_s19] sm:$0xff] %vm481_vm2, %v568_v46  ;;  %1496 = vmatmul.mubr.msk.f32.vlgmr.msra.gmra.mrb[2].mxu1 %vm481_vm2, %v568_v46  ;;  %1536 = vmatprep.mubr.msk.f32.mxu0 %vm1857_vm1, %v1858_v13 }
 0x506   : > { %1499 = vmatpush3.xpose.msk.msra.mxu1 %vm481_vm2, %v649_v40  ;;  %1500 = vmatprep.mubr.msk.f32.mxu1 %vm1857_vm1, %v1858_v13 }
 0x507   : > { %1503 = vmatprep.subr.mxu1 %v1858_v13 }
 0x509   : > { %1501 = vmatmul.mubr.msk.f32.vlgmr.msra.gmra.mrb[4].mxu1 %vm481_vm2, %v647_v41 }
 0x50a   : > { %1505 = vmatprep.mubr.msk.f32.mxu1 %vm1857_vm1, %v1858_v13 }
 0x5cf   : > { %v888_v48 = vpop.f32.mrb[2].mxu0 }
 0x5d0   : > { %v1512_v49 = vpop.f32.mrb[3].mxu0  ;;  %v892_v50 = vsel %vm481_vm2, %v888_v48, -inf }
 0x5d1   : > { %893 = vmax.xlane.f32.xlu1 %v892_v50 }
 0x5d7   : > { %v1056_v51 = vpop.f32.mrb[4].mxu0 }
 0x5d8   : > { %v2170_v52 = vpop.f32.mrb[2].mxu1  ;;  %v1522_v53 = vpop.f32.mrb[5].mxu0  ;;  %v1060_v58 = vsel %vm481_vm2, %v1056_v51, -inf }
 0x5d9   : > { %v1497_v54 = vpop.f32.mrb[3].mxu1 }
 0x5dc   : > { %v720_v55 = vpop.f32.mrb[4].mxu1 }
 0x5dd   : > { %v1502_v56 = vpop.f32.mrb[5].mxu1  ;;  %v724_v57 = vsel %vm481_vm2, %v720_v55, -inf }
 0x5de   : > { %725 = vmax.xlane.f32.xlu0 %v724_v57 }
 0x5e2   : > { %1061 = vmax.xlane.f32.xlu0 %v1060_v58 }
 0x65e   : > { %v894_v59 = vpop.xlane.xlu1 %893 }
 0x65f   : > { %v895_v60 = vsub.f32 %v888_v48, %v894_v59 }
 0x661   : > { %v896_v61 = vmul.f32 1.442695, %v895_v60 }
 0x663   : > { %1649 = vpow2.f32 %v896_v61 }
 0x66b   : > { %v726_v62 = vpop.xlane.xlu0 %725 }
 0x66c   : > { %v727_v63 = vsub.f32 %v720_v55, %v726_v62 }
 0x66d   : > { %v1650_v1 = vpop.eup %1649 }
 0x66e   : > { %v728_v2 = vmul.f32 1.442695, %v727_v63  ;;  %v898_v3 = vsel %vm481_vm2, %v1650_v1, 0.0 }
 0x66f   : > { %899 = vadd.xlane.f32.xlu0 %v898_v3  ;;  %v1062_v4 = vpop.xlane.xlu0 %1061 }
 0x670   : > { %1651 = vpow2.f32 %v728_v2  ;;  %v1063_v5 = vsub.f32 %v1056_v51, %v1062_v4 }
 0x672   : > { %v1064_v6 = vmul.f32 1.442695, %v1063_v5 }
 0x674   : > { %1653 = vpow2.f32 %v1064_v6 }
 0x67a   : > { %v1652_v7 = vpop.eup %1651 }
 0x67b   : > { %v730_v8 = vsel %vm481_vm2, %v1652_v7, 0.0 }
 0x67c   : > { %731 = vadd.xlane.f32.xlu0 %v730_v8 }
 0x67e   : > { %v1654_v9 = vpop.eup %1653 }
 0x67f   : > { %v1066_v11 = vsel %vm481_vm2, %v1654_v9, 0.0 }
 0x680   : > { %1067 = vadd.xlane.f32.xlu1 %v1066_v11 }
 0x691   : > { %906 = vrot.lane.b32.xlu1 %v2130_v26, %s1867_s16  ;;  %s2205_s16 = scalar_lea.hbm %s2297_s8, %s1450_s11 }
 0x692   : > { %738 = vrot.lane.b32.xlu0 %v2130_v26, %s1868_s18  ;;  %s1259_s18 = scalar_lea.sflag [#allocation10], %s2090_s21 }
 0x695   : > { %1074 = vrot.lane.b32.xlu1 %v2130_v26, %s1869_s25  ;;  %v1168_v26 = vld [vmem:[#allocation7 + $0x8] sm:$0xff]  ;;  %s1747_s25 = scalar_lea.vmem %s2207_s13, 512 }
 0x696   : > { %v1546_v27 = vpack.c.bf16 %v1168_v26, %v1167_v25  ;;  %p1748_p11 = scmp.ne.s32.totalorder %s2207_s13, %s1747_s25 }
 0x698   : > { %1547 = vmatpush3.bf16.msra.mxu0 %v1546_v27  ;;  %p1749_p1 = pnand %p1748_p11, %p2316_p0 }
 0x699   : > { %1548 = vmatprep.subr.bf16.mxu0 %v1856_v10 }
 0x69a   : > { %p1750_p3 = pneg %p1749_p1 }
 0x69c   : > { %1550 = vmatpush3.bf16.msra.mxu0 %v1549_v30 }
 0x6fc   : > { %v900_v12 = vpop.xlane.xlu0 %899 }
 0x6fd   : > { %1655 = vrcp.f32 %v900_v12 }
 0x707   : > { %v1656_v14 = vpop.eup %1655 }
 0x708   : > { %v903_v15 = vmul.f32 %v1656_v14, %v1650_v1 }
 0x709   : > { %v732_v16 = vpop.xlane.xlu0 %731 }
 0x70a   : > { %1435 = vst.msk [vmem:[%s2155_s19 + $0x10] sm:$0xff] %vm481_vm2, %v903_v15  ;;  %1657 = vrcp.f32 %v732_v16 }
 0x70d   : > { %v1068_v17 = vpop.xlane.xlu1 %1067  ;;  %v739_v18 = vpop.permute.xlu0 %738 }
 0x70e   : > { %1659 = vrcp.f32 %v1068_v17  ;;  %1504 = vmatpush3.msra.mxu1 %v739_v18 }
 0x70f   : > { %1513 = vmatprep.subr.mxu1 %v1858_v13 }
 0x711   : > { %v907_v21 = vpop.permute.xlu1 %906 }
 0x714   : > { %v1658_v19 = vpop.eup %1657 }
 0x715   : > { %v735_v20 = vmul.f32 %v1658_v19, %v1652_v7  ;;  %v1075_v24 = vpop.permute.xlu1 %1074 }
 0x717   : > { %1431 = vst.msk [vmem:[%s2155_s19 + $0x8] sm:$0xff] %vm481_vm2, %v735_v20  ;;  %1506 = vmatmul.mubr.msk.f32.vlgmr.msra.gmra.mrb[6].mxu1 %vm481_vm2, %v735_v20 }
 0x718   : > { %v1660_v22 = vpop.eup %1659  ;;  %1514 = vmatpush3.msra.mxu1 %v907_v21  ;;  %1515 = vmatprep.mubr.msk.f32.mxu1 %vm1857_vm1, %v1858_v13 }
 0x719   : > { %v1071_v23 = vmul.f32 %v1660_v22, %v1654_v9  ;;  %1523 = vmatprep.subr.mxu1 %v1858_v13 }
 0x71b   : > { %1439 = vst.msk [vmem:[%s2155_s19 + $0x18] sm:$0xff] %vm481_vm2, %v1071_v23  ;;  %1516 = vmatmul.mubr.msk.f32.vlgmr.msra.gmra.mrb[8].mxu1 %vm481_vm2, %v903_v15 }
 0x71c   : > { %1524 = vmatpush3.msra.mxu1 %v1075_v24  ;;  %1525 = vmatprep.mubr.msk.f32.mxu1 %vm1857_vm1, %v1858_v13 }
 0x71f   : > { %1526 = vmatmul.mubr.msk.f32.vlgmr.msra.gmra.mrb[10].mxu1 %vm481_vm2, %v1071_v23 }
 0x7ea   : > { %v810_v31 = vpop.f32.mrb[6].mxu1 }
 0x7eb   : > { %1151 = vrot.lane.b32.xlu1 %v810_v31, %s1870_s14  ;;  %v1507_v32 = vpop.f32.mrb[7].mxu1 }
 0x7ee   : > { %v978_v33 = vpop.f32.mrb[8].mxu1 }
 0x7ef   : > { %1155 = vrot.lane.b32.xlu0 %v978_v33, %s1871_s15  ;;  %v1517_v13 = vpop.f32.mrb[9].mxu1  ;;  %s1873_s15 = smov [#allocation9]  }
 0x7f2   : > { %v1146_v34 = vpop.f32.mrb[10].mxu1 }
 0x7f3   : > { %1159 = vrot.lane.b32.xlu1 %v1146_v34, %s1872_s24  ;;  %v1527_v10 = vpop.f32.mrb[11].mxu1  ;;  %s1751_s24 = sshll.u32 %s1873_s15, 4  ;;  %s1752_s24 = int_to_ptr.vmem [resolvable:$false] %s1751_s24 }
 0x7f4   : > { %s1753_s19 = scalar_lea.vmem %s1752_s24, 1024  ;;  %p1754_p7 = scmp.lt.s32.totalorder %s2207_s13, %s1752_s24 }
 0x7f5   : > { %p1755_p9 = scmp.lt.s32.totalorder %s1753_s19, %s1747_s25 }
 0x7f7   : > { %p1756_p12 = por %p1755_p9, %p1754_p7 }
 0x7f9   : > { %p1757_p2 = pnand %p1756_p12, %p1750_p3 }
 0x85d   : > { %v1152_v35 = vpop.permute.xlu1 %1151 }
 0x85e   : > { %v1162_v37 = vsel %vm481_vm2, %v2170_v52, %v1152_v35 }
 0x861   : > { %v1156_v36 = vpop.permute.xlu0 %1155 }
 0x862   : > { %v1164_v38 = vsel %vm1163_vm3, %v1162_v37, %v1156_v36 }
 0x865   : > { %v1160_v39 = vpop.permute.xlu1 %1159 }
 0x866   : > { %v1166_v40 = vsel %vm1165_vm4, %v1164_v38, %v1160_v39 }
 0x867   : > { %1537 = vmatmul.mubr.msk.f32.vlgmr.msra.gmra.mrb[6].mxu0 %vm364_vm0, %v1166_v40 }
 0x868   : > { %1760 = shalt.err (!%p1757_p2)
}
 0x869   : > { %s1761_s11 = scalar_lea.hbm %s2205_s16, 512  ;;  %s1765_s15 = scalar_lea.hbm %s2297_s8, 1024 }
 0x86a   : > { %p1762_p13 = scmp.ne.s32.totalorder %s2205_s16, %s1761_s11  ;;  %p1766_p4 = scmp.lt.u32.totalorder %s2205_s16, %s2297_s8 }
 0x86b   : > { %p1767_p5 = scmp.lt.u32.totalorder %s1765_s15, %s1761_s11  ;;  %p1769_p11 = scmp.lt.u32.totalorder %s1761_s11, %s2205_s16 }
 0x86c   : > { %p1763_p6 = pnand %p1762_p13, %p2316_p0 }
 0x86d   : > { %p1768_p8 = por %p1767_p5, %p1766_p4 }
 0x86e   : > { %p1764_p10 = pneg %p1763_p6 }
 0x86f   : > { %p1770_p1 = por %p1769_p11, %p1768_p8 }
 0x871   : > { %p1771_p3 = pnand %p1770_p1, %p1764_p10 }
 0x873   : > { %1774 = shalt.err (!%p1771_p3)
}
 0x874   : > { %s1874_s25 = smov 128   ;;  %v1441_v41 = vld [vmem:[%s2295_s6] ss:$0 sm:$0xff]  ;;  %s1445_s11 = sshll.u32 %s1942_s9, 7 }
 0x875   : > { %1562 = dma.vmem_to_hbm [thread:$0]  (%p2316_p0), %s2207_s13, 512, %s2205_s16, %s1259_s18, %s1874_s25, %s1874_s25, %s1870_s14  }
 0x876   : > { %s2317_s26 = sshll.u32 %s2090_s21, 3  ;;  %s2244_s1 = scalar_lea.hbm %s2296_s7, %s1445_s11 }
 0x877   : > { %s353_s17 = scalar_lea.vmem [#allocation8], %s2317_s26  ;;  %s1254_s9 = scalar_lea.sflag [#allocation4], %s2090_s21 }
 0x878   : > { %s1272_s15 = sshll.u32 %s353_s17, 4  ;;  %s1875_s13 = smov [#allocation8]   ;;  %s2246_s15 = int_to_ptr.vmem [resolvable:$true] %s1272_s15 }
 0x879   : > { %s1775_s14 = scalar_lea.vmem %s2246_s15, 128  ;;  %s1779_s16 = sshll.u32 %s1875_s13, 4  ;;  %s1780_s16 = int_to_ptr.vmem [resolvable:$false] %s1779_s16 }
 0x87a   : > { %p1776_p7 = scmp.ne.s32.totalorder %s2246_s15, %s1775_s14  ;;  %s1781_s18 = scalar_lea.vmem %s1780_s16, 256 }
 0x87b   : > { %p1782_p2 = scmp.lt.s32.totalorder %s2246_s15, %s1780_s16  ;;  %p1783_p13 = scmp.lt.s32.totalorder %s1781_s18, %s1775_s14 }
 0x87c   : > { %p1777_p9 = pnand %p1776_p7, %p2316_p0 }
 0x87d   : > { %p1784_p6 = por %p1783_p13, %p1782_p2 }
 0x87e   : > { %p1778_p12 = pneg %p1777_p9 }
 0x880   : > { %p1785_p10 = pnand %p1784_p6, %p1778_p12 }
 0x93a   : > { %v1247_v42 = vpop.f32.mrb[6].mxu0 }
 0x93b   : > { %v1248_v43 = vadd.f32 %v1441_v41, %v1247_v42  ;;  %v1538_v44 = vpop.f32.mrb[7].mxu0 }
 0x93d   : > { %v1251_v45 = vadd.f32 %v1248_v43, %v2104_v0 }
 0x93f   : > { %1252 = vst.msk [vmem:[%s353_s17] sm:$0xff] %vm364_vm0, %v1251_v45 }
 0x940   : > { %1788 = shalt.err (!%p1785_p10)
}
 0x941   : > { %s1789_s0 = scalar_lea.hbm %s2244_s1, 128  ;;  %s1793_s10 = scalar_lea.hbm %s2296_s7, 256 }
 0x942   : > { %p1790_p4 = scmp.ne.s32.totalorder %s2244_s1, %s1789_s0  ;;  %p1794_p11 = scmp.lt.u32.totalorder %s2244_s1, %s2296_s7 }
 0x943   : > { %p1795_p1 = scmp.lt.u32.totalorder %s1793_s10, %s1789_s0  ;;  %p1797_p7 = scmp.lt.u32.totalorder %s1789_s0, %s2244_s1 }
 0x944   : > { %p1791_p5 = pnand %p1790_p4, %p2316_p0 }
 0x945   : > { %p1796_p3 = por %p1795_p1, %p1794_p11 }
 0x946   : > { %p1792_p8 = pneg %p1791_p5 }
 0x947   : > { %p1798_p9 = por %p1797_p7, %p1796_p3 }
 0x949   : > { %p1799_p12 = pnand %p1798_p9, %p1792_p8 }
 0x94b   : > { %1802 = shalt.err (!%p1799_p12)
}
 0x94c   : > { %1561 = dma.vmem_to_hbm [thread:$0]  (%p2316_p0), %s2246_s15, 128, %s2244_s1, %s1254_s9  }
 0x94d PF: > { %s1300_s26 = sand.u32 1, %s1837_s27   ;;  %p2318_p2 = scmp.ne.s32.totalorder %s2305_s12, 0 }
 0x94e   : > { %p2319_p13 = scmp.ge.s32.totalorder %s1849_s30, 2  ;;  %s1301_s17 = scalar_lea.sflag [#allocation4], %s1300_s26 }
 0x950   : > { %p1577_p6 = pnand %p2319_p13, %p2318_p2 }
 0x952   : > { %1828 = dma.done.wait (!%p1577_p6), %s1301_s17, 128  }
 0x953   : > { %1830 = vsyncadd (!%p1577_p6), %s1301_s17, 4294967168  ;;  %s1310_s24 = scalar_lea.sflag [#allocation10], %s1300_s26 }
 0x954   : > { %1832 = dma.done.wait (!%p1577_p6), %s1310_s24, 512  }
 0x955   : > { %1834 = vsyncadd (!%p1577_p6), %s1310_s24, 4294966784  ;;  %p26_p0 = scmp.ge.s32.totalorder %s2031_s20, 4   ;;  %s2320_s27 = smov %s1841_s28 }
 0x956   : > { %s2321_s28 = smov %s1845_s29  ;;  %s2322_s29 = smov %s2047_s23 }
 0x957   : > { %s2323_s30 = smov %s2031_s20  ;;  %28 = sbr.rel (!%p26_p0) target bundleno = 11 (0xb), region = 121 }
 0x95e   :  { %1315 = vsyncpa [#allocation3], 1 }
 0x95f   :  { %1317 = vsyncpa [#allocation3 + $0x1], 1 }
 0x960   :  { %1318 = vsyncpa [#allocation6], 1 }
 0x961   :  { %1319 = vsyncpa [#allocation4], 1 }
 0x962   :  { %1321 = vsyncpa [#allocation4 + $0x1], 1 }
 0x963   :  { %1322 = vsyncpa [#allocation10], 1 }
 0x964   :  { %1324 = vsyncpa [#allocation10 + $0x1], 1 }

</bundles_post_ra>
